<compile_context>
chip_gen: v7x
topology: tpu7x:2x2x1
jax: 0.10.0
libtpu: 0.0.40
codegen_flags: <defaults>
</compile_context>

<pallas_src>
import math
from functools import partial

import numpy as np

import jax
import jax.numpy as jnp
from jax import lax
from jax.experimental import pallas as pl
from jax.experimental.pallas import tpu as pltpu


# --------------------------------------------------------------------------
# Kernel
# --------------------------------------------------------------------------
def _pe_add_kernel(off_ref, div_ref, base_ref, x_ref, o_ref, *, r_tile: int, group: int):
    # off_ref:  (1,) int32 in SMEM (sequence offset, 0 in eval mode)
    # div_ref / base_ref: (1, L) f32 constant rows
    # x_ref / o_ref: (b_tile, r_tile, L) VMEM tiles
    ri = pl.program_id(1)

    # Row index inside the (B, R, L) view -> base sequence position of the row.
    # For a partial last tile Pallas drops OOB writes, so positions derived
    # from program_id stay correct for all valid rows.
    row = lax.broadcasted_iota(jnp.int32, (r_tile, 1), 0) + ri * r_tile
    pos0 = (row * group + off_ref[0]).astype(jnp.float32)          # (r_tile, 1)

    # angle[r, j] = (pos0[r] + j//D) * div_term[j%D] + phase[j%D]
    #             =  pos0[r] * div_row[j] + base_row[j]
    angle = pos0 * div_ref[...] + base_ref[...]                     # (r_tile, L) f32
    pe = jnp.sin(angle)   # odd columns are cos via a +pi/2 phase in base_row

    # f32 add + single downcast (v5e-friendly; no-op casts for f32 inputs).
    o_ref[...] = (x_ref[...].astype(jnp.float32) + pe[None, :, :]).astype(o_ref.dtype)


# --------------------------------------------------------------------------
# Wrapper helpers
# --------------------------------------------------------------------------
def _lane_group(S: int, D: int) -> int:
    """Smallest g with (g*D) % 128 == 0 that also tiles S; else 1."""
    if D % 128 == 0:
        return 1
    g = 128 // math.gcd(D, 128)
    return g if (g <= S and S % g == 0) else 1


def _largest_divisor_leq(n: int, cap: int) -> int:
    cap = max(1, min(n, cap))
    for t in range(cap, 0, -1):
        if n % t == 0:
            return t
    return 1


def _vmem_budget() -> tuple[int, int]:
    """(per-buffer block budget, scoped vmem limit) -- generation aware."""
    try:
        cap = int(pltpu.get_tpu_info().vmem_capacity_bytes)
    except Exception:
        cap = 64 * 1024 * 1024  # conservative fallback
    if cap >= 128 * 1024 * 1024:                       # v5e / v6e (128 MiB VMEM)
        return 8 * 1024 * 1024, 64 * 1024 * 1024
    # v7x: 64 MiB VMEM per TC -> keep 2x(in)+2x(out) buffers ~16 MiB total.
    return 4 * 1024 * 1024, min(36 * 1024 * 1024, cap)


def _pe_tables(D: int, L: int) -> tuple[jax.Array, jax.Array]:
    """numpy compile-time constant (1, L) rows: div_row, base_row."""
    j = np.arange(L)
    d = j % D                                           # feature index
    div_term = np.exp((2 * (d // 2)).astype(np.float64) * (-math.log(10000.0) / D))
    phase = (d % 2).astype(np.float64) * (math.pi / 2.0)   # odd cols -> cos
    intra = (j // D).astype(np.float64)                 # position offset inside the row
    div_row = div_term
    base_row = intra * div_term + phase
    return (jnp.asarray(div_row[None, :], dtype=jnp.float32),
            jnp.asarray(base_row[None, :], dtype=jnp.float32))


# --------------------------------------------------------------------------
# Public entry point
# --------------------------------------------------------------------------
def _positional_encoding(x: jax.Array, offset=0) -> jax.Array:
    """x + sinusoidal PE starting at `offset`.  x: (B, S, D)."""
    # TODO(synk): the torch.randint draw of the training-mode random offset is
    # left to the caller; pass it here as `offset` (traced scalar, no recompile).
    B, S, D = x.shape

    # ---- lane-dense view: (B, S, D) -> (B, R, L) with L a multiple of 128 ----
    g = _lane_group(S, D)
    R, L = S // g, g * D
    x3 = x.reshape(B, R, L)

    div_row, base_row = _pe_tables(D, L)
    off = jnp.asarray(offset, dtype=jnp.int32).reshape((1,))

    # ---- tile selection: VMEM-budgeted, batch tiled too (no B*D blowup) -----
    itemsize = jnp.dtype(x.dtype).itemsize
    per_buffer, vmem_limit = _vmem_budget()
    row_bytes = L * itemsize
    rows_fit = max(1, per_buffer // row_bytes)

    if rows_fit >= R:
        r_tile = R
        b_fit = max(1, per_buffer // (R * row_bytes))
        b_tile = _largest_divisor_leq(B, b_fit)
    else:
        b_tile = 1
        cap = (min(R, rows_fit) // 8) * 8
        r_tile = 0
        for t in range(cap, 7, -8):            # prefer exact divisors of R
            if R % t == 0:
                r_tile = t
                break
        if r_tile == 0:                         # aligned non-divisor tile;
            r_tile = min(R, max(8, cap))        # partial last tile is write-masked

    # v7x megacore / pipelining: never leave a >1 MiB tensor as a 1-step grid.
    total_bytes = B * R * L * itemsize
    if (pl.cdiv(B, b_tile) * pl.cdiv(R, r_tile) == 1) and total_bytes > (1 << 20):
        if B > 1:
            b_tile = _largest_divisor_leq(B, B // 2)
        elif R % 16 == 0:
            r_tile = R // 2
        elif R > 8:
            r_tile = max(8, (((R + 1) // 2) // 8) * 8)

    grid = (pl.cdiv(B, b_tile), pl.cdiv(R, r_tile))

    kernel = partial(_pe_add_kernel, r_tile=r_tile, group=g)

    out = pl.pallas_call(
        kernel,
        out_shape=jax.ShapeDtypeStruct((B, R, L), x.dtype),
        grid_spec=pltpu.PrefetchScalarGridSpec(
            num_scalar_prefetch=0,
            grid=grid,
            in_specs=[
                pl.BlockSpec(memory_space=pltpu.MemorySpace.SMEM),            # offset
                pl.BlockSpec((1, L), lambda bi, ri: (0, 0)),                  # div_row
                pl.BlockSpec((1, L), lambda bi, ri: (0, 0)),                  # base_row
                pl.BlockSpec((b_tile, r_tile, L), lambda bi, ri: (bi, ri, 0)),  # x
            ],
            out_specs=pl.BlockSpec((b_tile, r_tile, L), lambda bi, ri: (bi, ri, 0)),
        ),
        # In-place add when the caller donates x (free for jit intermediates);
        # non-donated callers get one XLA-inserted protective copy.
        input_output_aliases={3: 0},
        compiler_params=pltpu.CompilerParams(
            dimension_semantics=("parallel", "parallel"),
            vmem_limit_bytes=vmem_limit,
        ),
    )(off, div_row, base_row, x3)

    return out.reshape(B, S, D)


positional_encoding = jax.jit(_positional_encoding)


# --------------------------------------------------------------------------
# Pure-JAX reference (mirrors the PyTorch module) and self-test
# --------------------------------------------------------------------------
def _reference(x: jax.Array, offset: int = 0) -> jax.Array:
    B, S, D = x.shape
    position = (jnp.arange(S, dtype=jnp.float32) + offset)[:, None]
    div_term = jnp.exp(
        jnp.arange(0, D, 2, dtype=jnp.float32) * (-math.log(10000.0) / D)
    )
    pe = jnp.zeros((S, D), dtype=jnp.float32)
    pe = pe.at[:, 0::2].set(jnp.sin(position * div_term))
    pe = pe.at[:, 1::2].set(jnp.cos(position * div_term))
    return (x.astype(jnp.float32) + pe[None, :, :]).astype(x.dtype)


if __name__ == "__main__":
    key = jax.random.PRNGKey(0)
    B, S, D = 2, 8, 32  # batch, seq, d_model
    x = jax.random.normal(key, (B, S, D), dtype=jnp.float32)

    # References computed before the (aliased) kernel calls.
    ref0 = _reference(x)
    ref5 = _reference(x, offset=5)

    out0 = jax.block_until_ready(positional_encoding(x))
    assert out0.shape == ref0.shape and out0.dtype == ref0.dtype
    assert jnp.allclose(out0, ref0, atol=1e-5, rtol=1e-5), "mismatch vs reference"

    out5 = jax.block_until_ready(positional_encoding(x, 5))
    assert jnp.allclose(out5, ref5, atol=1e-5, rtol=1e-5), "offset mismatch vs reference"

    print("KERNEL_OK")
</pallas_src>

<mosaic_0001>
module attributes {stable_mosaic.version = 11 : i64} {
  func.func @_pe_add_kernel(%arg0: i32, %arg1: i32, %arg2: memref<1xi32, #tpu.memory_space<smem>>, %arg3: memref<1x128xf32, #tpu.memory_space<vmem>>, %arg4: memref<1x128xf32, #tpu.memory_space<vmem>>, %arg5: memref<2x2x128xf32, #tpu.memory_space<vmem>>, %arg6: memref<2x2x128xf32, #tpu.memory_space<vmem>>) attributes {dimension_semantics = [#tpu.dimension_semantics<parallel>, #tpu.dimension_semantics<parallel>], iteration_bounds = array<i64: 1, 1>, scalar_prefetch = 0 : i64, scratch_operands = 0 : i64, tpu.core_type = #tpu.core_type<tc>, window_params = [{transform_indices = @transform_0, window_bounds = array<i64: 1>}, {pipeline_mode = #tpu.pipeline_mode<synchronous>, transform_indices = @transform_1, window_bounds = array<i64: 1, 128>}, {pipeline_mode = #tpu.pipeline_mode<synchronous>, transform_indices = @transform_2, window_bounds = array<i64: 1, 128>}, {transform_indices = @transform_3, window_bounds = array<i64: 2, 2, 128>}, {transform_indices = @transform_4, window_bounds = array<i64: 2, 2, 128>}]} {
    %0 = tpu.iota {dimensions = array<i32: 0>} : vector<2x1xi32>
    %c2_i32 = arith.constant 2 : i32
    %1 = arith.muli %arg1, %c2_i32 : i32
    %2 = vector.broadcast %1 : i32 to vector<2x1xi32>
    %3 = arith.addi %0, %2 : vector<2x1xi32>
    %c4_i32 = arith.constant 4 : i32
    %4 = vector.broadcast %c4_i32 : i32 to vector<2x1xi32>
    %5 = arith.muli %3, %4 : vector<2x1xi32>
    %c0 = arith.constant 0 : index
    %6 = memref.load %arg2[%c0] : memref<1xi32, #tpu.memory_space<smem>>
    %7 = vector.broadcast %6 : i32 to vector<2x1xi32>
    %8 = arith.addi %5, %7 : vector<2x1xi32>
    %9 = arith.sitofp %8 : vector<2x1xi32> to vector<2x1xf32>
    %c0_0 = arith.constant 0 : index
    %c0_1 = arith.constant 0 : index
    %10 = vector.load %arg3[%c0_0, %c0_1] : memref<1x128xf32, #tpu.memory_space<vmem>>, vector<1x128xf32>
    %11 = vector.broadcast %9 : vector<2x1xf32> to vector<2x128xf32>
    %12 = vector.broadcast %10 : vector<1x128xf32> to vector<2x128xf32>
    %13 = arith.mulf %11, %12 : vector<2x128xf32>
    %c0_2 = arith.constant 0 : index
    %c0_3 = arith.constant 0 : index
    %14 = vector.load %arg4[%c0_2, %c0_3] : memref<1x128xf32, #tpu.memory_space<vmem>>, vector<1x128xf32>
    %15 = vector.broadcast %14 : vector<1x128xf32> to vector<2x128xf32>
    %16 = arith.addf %13, %15 : vector<2x128xf32>
    %17 = math.sin %16 : vector<2x128xf32>
    %c0_4 = arith.constant 0 : index
    %c0_5 = arith.constant 0 : index
    %c0_6 = arith.constant 0 : index
    %18 = vector.load %arg5[%c0_4, %c0_5, %c0_6] : memref<2x2x128xf32, #tpu.memory_space<vmem>>, vector<2x2x128xf32>
    %19 = vector.shape_cast %17 : vector<2x128xf32> to vector<1x2x128xf32>
    %20 = vector.broadcast %19 : vector<1x2x128xf32> to vector<2x2x128xf32>
    %21 = arith.addf %18, %20 : vector<2x2x128xf32>
    %c0_7 = arith.constant 0 : index
    %c0_8 = arith.constant 0 : index
    %c0_9 = arith.constant 0 : index
    %22 = vector.load %arg6[%c0_7, %c0_8, %c0_9] : memref<2x2x128xf32, #tpu.memory_space<vmem>>, vector<2x2x128xf32>
    tpu.vector_store %arg6[%c0_7, %c0_8, %c0_9], %21 {strides = array<i32>} : memref<2x2x128xf32, #tpu.memory_space<vmem>>, vector<2x2x128xf32>,
    return
  }
  func.func @transform_0(%arg0: i32, %arg1: i32) -> i32 {
    %c0_i32 = arith.constant 0 : i32
    %c0_i32_0 = arith.constant 0 : i32
    return %c0_i32 : i32
  }
  func.func @transform_1(%arg0: i32, %arg1: i32) -> (i32, i32) {
    %c0_i32 = arith.constant 0 : i32
    %c0_i32_0 = arith.constant 0 : i32
    %c0_i32_1 = arith.constant 0 : i32
    return %c0_i32, %c0_i32_0 : i32, i32
  }
  func.func @transform_2(%arg0: i32, %arg1: i32) -> (i32, i32) {
    %c0_i32 = arith.constant 0 : i32
    %c0_i32_0 = arith.constant 0 : i32
    %c0_i32_1 = arith.constant 0 : i32
    return %c0_i32, %c0_i32_0 : i32, i32
  }
  func.func @transform_3(%arg0: i32, %arg1: i32) -> (i32, i32, i32) {
    %c0_i32 = arith.constant 0 : i32
    %c0_i32_0 = arith.constant 0 : i32
    return %arg0, %arg1, %c0_i32 : i32, i32, i32
  }
  func.func @transform_4(%arg0: i32, %arg1: i32) -> (i32, i32, i32) {
    %c0_i32 = arith.constant 0 : i32
    %c0_i32_0 = arith.constant 0 : i32
    return %arg0, %arg1, %c0_i32 : i32, i32, i32
  }
}

</mosaic_0001>

<bundles_post_ra>
// kernel: _positional_encoding.1
= control target key start
LH: loop header
LB: loop body
LE: loop exit
PB: predicated region body
PF: predicated region fallthrough
CT: control target
= control target key end

     0   :  { %v18_v0 = vlaneseq  ;;  %v178_v21 = vmov 683565275   ;;  %v179_v23 = vmov 2475754826   ;;  %v180_v25 = vmov 2131351028   ;;  %s251_s0 = inlined_call_operand.<no memory space> [shape: s32[1], index: 0, kind: input, shape index: {}]   ;;  %s252_s1 = inlined_call_operand.vmem [shape: f32[1,128], index: 1, kind: input, shape index: {}]   ;;  %s253_s2 = inlined_call_operand.vmem [shape: f32[1,128], index: 2, kind: input, shape index: {}]   ;;  %s254_s3 = inlined_call_operand.vmem [shape: f32[2,2,128], index: 3, kind: input, shape index: {}, may-alias: {3,4}]   ;;  %s255_s4 = inlined_call_operand.vmem [shape: f32[2,2,128], index: 4, kind: output, shape index: {}, may-alias: {3,4}]  }
   0x1   :  { %v25_v2 = vstv %s251_s0  ;;  %v158_v5 = vld [vmem:[%s252_s1] ss:$0 sm:$0xff]  ;;  %v181_v27 = vmov 2102212464   ;;  %v182_v29 = vmov 920167782  }
   0x2   :  { %v19_v1 = vshrl.u32 %v18_v0, 7  ;;  %v159_v7 = vld [vmem:[%s253_s2] ss:$0 sm:$0xff]  ;;  %v183_v36 = vmov 1326507024  }
   0x4   :  { %v23_v3 = vmul.u32 4, %v19_v1 }
   0x6   :  { %v26_v4 = vadd.s32 %v25_v2, %v23_v3 }
   0x8   :  { %v27_v6 = vcvt.s32.f32 %v26_v4 }
   0xa   :  { %v35_v8 = vmul.f32 %v158_v5, %v27_v6 }
   0xc   :  { %v218_v9 = vadd.f32 %v159_v7, %v35_v8 }
   0xe   :  { %v47_v10 = vand.u32 2139095040, %v218_v9  ;;  %v44_v12 = vand.u32 2147483647, %v218_v9  ;;  %vm46_vm7 = vcmp.lt.s32.totalorder %v218_v9, 0  ;;  %vm136_vm12 = vweird.f32 %v218_v9 }
  0x10   :  { %v48_v11 = vshrl.u32 %v47_v10, 23  ;;  %v51_v15 = vand.u32 8388607, %v44_v12  ;;  %vm45_vm8 = vcmp.le.f32.partialorder %v44_v12, 0.7853982 }
  0x12   :  { %v160_v13 = vadd.s32 4294967169, %v48_v11  ;;  %v52_v18 = vor.u32 8388608, %v51_v15 }
  0x14   :  { %v54_v14 = vadd.s32 1, %v160_v13  ;;  %v92_v38 = vshll.u32 %v52_v18, 8 }
  0x16   :  { %vm55_vm0 = vcmp.gt.s32.totalorder %v54_v14, 0 }
  0x17   :  { %v56_v16 = vsel %vm55_vm0, %v54_v14, 0 }
  0x18   :  { %v58_v17 = vand.u32 31, %v56_v16  ;;  %v57_v19 = vshrl.u32 %v56_v16, 5 }
  0x1a   :  { %v59_v20 = vsub.s32 32, %v58_v17  ;;  %v61_v22 = vshll.u32 %v178_v21, %v58_v17  ;;  %v64_v24 = vshll.u32 %v179_v23, %v58_v17  ;;  %v67_v26 = vshll.u32 %v180_v25, %v58_v17 }
  0x1b   :  { %v70_v28 = vshll.u32 %v181_v27, %v58_v17  ;;  %v73_v30 = vshll.u32 %v182_v29, %v58_v17  ;;  %vm76_vm1 = vcmp.lt.s32.totalorder %v57_v19, 1  ;;  %vm79_vm2 = vcmp.lt.s32.totalorder %v57_v19, 4 }
  0x1c   :  { %v60_v31 = vshrl.u32 %v178_v21, %v59_v20  ;;  %v62_v32 = vshrl.u32 %v179_v23, %v59_v20  ;;  %v65_v33 = vshrl.u32 %v180_v25, %v59_v20  ;;  %v68_v34 = vshrl.u32 %v181_v27, %v59_v20 }
  0x1d   :  { %v71_v35 = vshrl.u32 %v182_v29, %v59_v20  ;;  %v74_v37 = vshrl.u32 %v183_v36, %v59_v20  ;;  %vm77_vm3 = vcmp.lt.s32.totalorder %v57_v19, 2  ;;  %vm78_vm4 = vcmp.lt.s32.totalorder %v57_v19, 3  ;;  %v148_v36 = vld [vmem:[%s254_s3] sm:$0x3] }
  0x1e   :  { %v63_v39 = vor.u32 %v62_v32, %v61_v22  ;;  %v66_v40 = vor.u32 %v65_v33, %v64_v24  ;;  %v69_v41 = vor.u32 %v68_v34, %v67_v26 }
  0x1f   :  { %v72_v42 = vor.u32 %v71_v35, %v70_v28  ;;  %v75_v43 = vor.u32 %v74_v37, %v73_v30  ;;  %v149_v37 = vld [vmem:[%s254_s3 + $0x2] sm:$0x3] }
  0x20   :  { %v80_v44 = vsel %vm76_vm1, %v60_v31, %v63_v39  ;;  %v81_v45 = vsel %vm79_vm2, %v69_v41, 2102212464  ;;  %v84_v46 = vsel %vm76_vm1, %v63_v39, %v66_v40  ;;  %v88_v47 = vsel %vm76_vm1, %v66_v40, %v69_v41 }
  0x21   :  { %v82_v48 = vsel %vm78_vm4, %v66_v40, %v81_v45  ;;  %v85_v49 = vsel %vm79_vm2, %v72_v42, 920167782  ;;  %v89_v50 = vsel %vm79_vm2, %v75_v43, 1326507024 }
  0x22   :  { %v86_v51 = vsel %vm78_vm4, %v69_v41, %v85_v49  ;;  %v90_v52 = vsel %vm78_vm4, %v72_v42, %v89_v50  ;;  %v83_v53 = vsel %vm77_vm3, %v80_v44, %v82_v48 }
  0x23   :  { %v87_v54 = vsel %vm77_vm3, %v84_v46, %v86_v51  ;;  %v91_v55 = vsel %vm77_vm3, %v88_v47, %v90_v52  ;;  %v99_v60 = vmul.u32 %v92_v38, %v83_v53 }
  0x24   :  { %v224_v56 = vmul.u32.u64.low %v92_v38, %v91_v55  ;;  %v225_v57 = vmul.u32.u64.high %v92_v38, %v91_v55, %v224_v56  ;;  %v227_v58 = vmul.u32.u64.low %v92_v38, %v87_v54  ;;  %v228_v59 = vmul.u32.u64.high %v92_v38, %v87_v54, %v227_v58 }
  0x26   :  { %vm101_vm5 = vc.u32 %v225_v57, %v227_v58  ;;  %v102_v61 = vadd.s32 1, %v228_v59  ;;  %v100_v8 = vadd.s32 %v227_v58, %v225_v57 }
  0x28   :  { %v103_v62 = vsel %vm101_vm5, %v102_v61, %v228_v59 }
  0x29   :  { %v104_v63 = vadd.s32 %v103_v62, %v99_v60 }
  0x2b   :  { %v105_v0 = vadd.s32 536870912, %v104_v63 }
  0x2d   :  { %v106_v1 = vshrl.u32 %v105_v0, 30 }
  0x2f   :  { %v107_v2 = vshll.u32 %v106_v1, 30  ;;  %v130_v22 = vsub.s32 4, %v106_v1 }
  0x31   :  { %v108_v3 = vsub.s32 %v104_v63, %v107_v2  ;;  %v131_v25 = vsel %vm46_vm7, %v130_v22, %v106_v1 }
  0x32   :  { %v133_v28 = vsel %vm45_vm8, 0, %v131_v25 }
  0x33   :  { %v110_v4 = vsub.s32 0, %v108_v3  ;;  %v137_v29 = vadd.s32 3, %v133_v28 }
  0x35   :  { %v161_v5 = vmin.u32 %v110_v4, %v108_v3  ;;  %v138_v30 = vand.u32 3, %v137_v29 }
  0x37   :  { %v112_v6 = vclz %v161_v5  ;;  %vm143_vm9 = vcmp.eq.s32.totalorder %v138_v30, 2  ;;  %vm140_vm10 = vcmp.eq.s32.totalorder %v138_v30, 0  ;;  %vm139_vm11 = vcmp.lt.s32.totalorder %v138_v30, 2 }
  0x39   :  { %v162_v7 = vadd.s32 4294967294, %v112_v6 }
  0x3b   :  { %vm163_vm6 = vcmp.lt.s32.totalorder %v162_v7, 0 }
  0x3c   :  { %v115_v10 = vsel %vm163_vm6, 0, %v162_v7 }
  0x3d   :  { %v116_v11 = vsub.s32 32, %v115_v10  ;;  %v117_v13 = vshll.u32 %v108_v3, %v115_v10  ;;  %v120_v14 = vsub.s32 4294967266, %v115_v10 }
  0x3f   :  { %v118_v15 = vshrl.u32 %v100_v8, %v116_v11  ;;  %v121_v16 = vadd.s32 127, %v120_v14 }
  0x41   :  { %v119_v17 = vor.u32 %v118_v15, %v117_v13  ;;  %v122_v18 = vshll.u32 %v121_v16, 23 }
  0x43   :  { %v123_v19 = vor.u32 4788187, %v122_v18  ;;  %v126_v20 = vcvt.s32.f32 %v119_v17 }
  0x45   :  { %v124_v21 = vand.u32 2147483647, %v123_v19 }
  0x47   :  { %v127_v23 = vmul.f32 %v126_v20, %v124_v21 }
  0x49   :  { %v128_v24 = vxor.u32 2147483648, %v127_v23 }
  0x4b   :  { %v129_v26 = vsel %vm46_vm7, %v128_v24, %v127_v23 }
  0x4c   :  { %v132_v27 = vsel %vm45_vm8, %v218_v9, %v129_v26 }
  0x4d   :  { %174 = vcosq.f32 %v132_v27 }
  0x4e   :  { %176 = vsinq.f32 %v132_v27 }
  0x57   :  { %v175_v31 = vpop.eup %174 }
  0x58   :  { %v177_v32 = vpop.eup %176  ;;  %v144_v33 = vxor.u32 2147483648, %v175_v31 }
  0x59   :  { %v141_v34 = vxor.u32 2147483648, %v177_v32 }
  0x5a   :  { %v145_v12 = vsel %vm143_vm9, %v144_v33, %v177_v32 }
  0x5b   :  { %v142_v35 = vsel %vm140_vm10, %v175_v31, %v141_v34 }
  0x5c   :  { %v146_v38 = vsel %vm139_vm11, %v142_v35, %v145_v12 }
  0x5d   :  { %v147_v39 = vsel %vm136_vm12, nan, %v146_v38 }
  0x5e   :  { %v150_v40 = vadd.f32 %v148_v36, %v147_v39  ;;  %v151_v41 = vadd.f32 %v149_v37, %v147_v39 }
  0x60   :  { %152 = vst [vmem:[%s255_s4] sm:$0x3] %v150_v40  ;;  %153 = vst [vmem:[%s255_s4 + $0x2] sm:$0x3] %v151_v41 }

</bundles_post_ra>
